<compile_context>
chip_gen: v5e
topology: v5e:2x2
jax: 0.10.0
libtpu: 0.0.40
codegen_flags: <defaults>
</compile_context>

<pallas_src>
import functools

import jax
import jax.numpy as jnp
from jax import lax
from jax.experimental import pallas as pl
from jax.experimental.pallas import tpu as pltpu


def _round_up(a, b):
    return ((a + b - 1) // b) * b


def _cdiv(a, b):
    return (a + b - 1) // b


def _delta_t_rnn_kernel(x_ref, wih_ref, whh_ref, b_ref, wfc_ref,
                        y_ref, h_ref, xw_ref, *, unroll):
    """One (batch-chunk, time-chunk) grid step.

    x_ref  : (T_CH, NB, Mp)      raw input chunk (time-major, zero-padded)
    wih_ref: (Mp, Hp)            W_ih^T (dt column folded into bias)
    whh_ref: (Hp, Hp)            W_hh^T
    b_ref  : (1, Hp)             b_ih + b_hh + W_ih[:, M] / T
    wfc_ref: (1, Hp)             fc weight row (output_dim == 1)
    y_ref  : (T_CH, NB)          fused fc output block
    h_ref  : (NB, Hp)   VMEM     hidden-state carry across time chunks
    xw_ref : (T_CH, NB, Hp) VMEM precomputed input projection for the chunk
    """
    t_chunk, nb, mp = x_ref.shape
    hp = whh_ref.shape[0]

    # Grid = (batch_chunks [parallel], time_chunks [arbitrary]).
    @pl.when(pl.program_id(1) == 0)
    def _():
        h_ref[...] = jnp.zeros_like(h_ref)

    # Time-parallel input projection for the whole chunk: one MXU matmul,
    # hoisted out of the serial loop.  (Leading-dim merge/split reshapes are
    # layout-preserving: NB and T_CH are multiples of 8.)
    x_flat = x_ref[...].reshape(t_chunk * nb, mp)
    xw = jnp.dot(x_flat, wih_ref[...], preferred_element_type=jnp.float32)
    xw_ref[...] = (xw + b_ref[...]).reshape(t_chunk, nb, hp)

    whh = whh_ref[...]
    wfc = wfc_ref[...]                          # (1, Hp)

    def body(t, h):
        pre = xw_ref[t] + jnp.dot(h, whh, preferred_element_type=jnp.float32)
        h_new = jnp.tanh(pre)
        # Fused fc (output_dim == 1): cross-lane reduce; it does not feed back
        # into h, so it stays off the recurrence's critical path.
        y_ref[t] = jnp.sum(h_new * wfc, axis=-1)
        return h_new

    h_ref[...] = lax.fori_loop(0, t_chunk, body, h_ref[...], unroll=unroll)


def delta_t_rnn_forward(x, params):
    """x: (N, T, M) float32.  Returns (N, T) float32 (output_dim == 1)."""
    N, T, M = x.shape
    w_ih, w_hh, b_ih, b_hh, w_fc, b_fc = (
        params["w_ih"], params["w_hh"], params["b_ih"],
        params["b_hh"], params["w_fc"], params["b_fc"])
    H = w_hh.shape[0]
    assert w_fc.shape[0] == 1, "kernel fuses fc assuming output_dim == 1"
    f32 = jnp.float32

    # ---- padded sizes -------------------------------------------------------
    Hp = _round_up(H, 128)                     # lane-dense hidden dim
    Mp = _round_up(M, 8)                       # aligned input-channel dim
    N_pad = _round_up(N, 8)                    # sublane-friendly batch

    # ---- per-chip VMEM budget -> tile sizes ---------------------------------
    try:
        vmem_cap = int(pltpu.get_tpu_info().vmem_capacity_bytes)
    except Exception:
        vmem_cap = 64 * 1024 * 1024
    budget = (vmem_cap * 3) // 4               # ~48 MiB on v7x, ~96 MiB on v5e/v6e

    # Batch chunk: 256 rows feeds a 256x256 MXU (v6e/v7x); small batches stay whole.
    if N_pad <= 128:
        NB = N_pad
    elif N_pad >= 256:
        NB = 256
    else:
        NB = 128
    N_pad = _round_up(N_pad, NB)

    # Time chunk from the VMEM budget.  Dominant users:
    #   xw scratch T_CH*NB*Hp*4, x in-buffers 2*T_CH*NB*Mp*4, y out 2*T_CH*NB*4,
    # plus (double-buffered) weights and the carry.
    fixed = 4 * (2 * (Mp * Hp + Hp * Hp + 2 * Hp) + NB * Hp)
    per_t = 4 * NB * (Hp + 2 * Mp + 2)
    t_cap = max(8, min(256, (int(budget * 0.9) - fixed) // per_t))
    n_tc = _cdiv(T, t_cap)
    T_CH = _round_up(_cdiv(T, n_tc), 8)        # minimize time-pad waste
    T_pad = n_tc * T_CH
    unroll = True if T_CH <= 32 else 8

    # ---- weight / bias prep (dt channel folded into the bias) ---------------
    wih_t = jnp.zeros((Mp, Hp), f32).at[:M, :H].set(w_ih[:, :M].T)
    whh_t = jnp.zeros((Hp, Hp), f32).at[:H, :H].set(w_hh.T)
    bias = jnp.zeros((1, Hp), f32).at[0, :H].set(b_ih + b_hh + w_ih[:, M] / T)
    wfc_r = jnp.zeros((1, Hp), f32).at[0, :H].set(w_fc[0])

    # Time-major, zero-padded input (no dt concat, no xw materialization).
    xt = jnp.transpose(x.astype(f32), (1, 0, 2))
    xt = jnp.pad(xt, ((0, T_pad - T), (0, N_pad - N), (0, Mp - M)))

    # ---- Pallas kernel -------------------------------------------------------
    kernel = functools.partial(_delta_t_rnn_kernel, unroll=unroll)

    grid_spec = pltpu.PrefetchScalarGridSpec(
        num_scalar_prefetch=0,
        grid=(N_pad // NB, T_pad // T_CH),
        in_specs=[
            pl.BlockSpec((T_CH, NB, Mp), lambda b, t: (t, b, 0)),   # x chunk
            pl.BlockSpec((Mp, Hp), lambda b, t: (0, 0)),            # W_ih^T
            pl.BlockSpec((Hp, Hp), lambda b, t: (0, 0)),            # W_hh^T
            pl.BlockSpec((1, Hp), lambda b, t: (0, 0)),             # bias
            pl.BlockSpec((1, Hp), lambda b, t: (0, 0)),             # fc weight
        ],
        out_specs=pl.BlockSpec((T_CH, NB), lambda b, t: (t, b)),
        scratch_shapes=[
            pltpu.VMEM((NB, Hp), f32),            # hidden-state carry
            pltpu.VMEM((T_CH, NB, Hp), f32),      # chunk input-projection
        ],
    )

    y = pl.pallas_call(
        kernel,
        out_shape=jax.ShapeDtypeStruct((T_pad, N_pad), f32),
        grid_spec=grid_spec,
        compiler_params=pltpu.CompilerParams(
            dimension_semantics=("parallel", "arbitrary"),
            vmem_limit_bytes=int(budget)),
    )(xt, wih_t, whh_t, bias, wfc_r)

    # Slice padding, add the tiny fc bias, and return (N, T).
    return jnp.transpose(y[:T, :N], (1, 0)) + b_fc[0]


def init_params(key, input_dim, hidden_dim, output_dim):
    """Deterministic init mimicking nn.RNN/nn.Linear uniform(-1/sqrt(fan), ...)."""
    k = jax.random.split(key, 6)
    s = 1.0 / jnp.sqrt(hidden_dim)
    in_dim = input_dim + 1  # +1 for the dt channel
    return {
        "w_ih": jax.random.uniform(k[0], (hidden_dim, in_dim), jnp.float32, -s, s),
        "w_hh": jax.random.uniform(k[1], (hidden_dim, hidden_dim), jnp.float32, -s, s),
        "b_ih": jax.random.uniform(k[2], (hidden_dim,), jnp.float32, -s, s),
        "b_hh": jax.random.uniform(k[3], (hidden_dim,), jnp.float32, -s, s),
        "w_fc": jax.random.uniform(k[4], (output_dim, hidden_dim), jnp.float32, -s, s),
        "b_fc": jax.random.uniform(k[5], (output_dim,), jnp.float32, -s, s),
    }


def delta_t_rnn_reference(x, params):
    """Pure-JAX reference (lax.scan, full f32 matmul precision)."""
    N, T, M = x.shape
    hi = lax.Precision.HIGHEST
    dt = jnp.full((N, T, 1), 1.0 / T, dtype=x.dtype)
    inp = jnp.concatenate([x, dt], axis=2)                   # (N, T, M+1)
    h0 = jnp.zeros((N, params["w_hh"].shape[0]), jnp.float32)

    def step(h, x_t):
        h_new = jnp.tanh(
            jnp.dot(x_t, params["w_ih"].T, precision=hi) + params["b_ih"]
            + jnp.dot(h, params["w_hh"].T, precision=hi) + params["b_hh"])
        return h_new, h_new

    _, hs = lax.scan(step, h0, jnp.transpose(inp, (1, 0, 2)))    # (T, N, H)
    y = jnp.dot(hs, params["w_fc"].T, precision=hi) + params["b_fc"]
    return jnp.transpose(y[..., 0], (1, 0))                      # (N, T)


if __name__ == "__main__":
    N, T, M = 2, 8, 4        # batch, seq, input_dim
    H, O = 32, 1             # hidden_dim, output_dim

    key = jax.random.PRNGKey(0)
    kx, kp = jax.random.split(key)
    x = jax.random.normal(kx, (N, T, M), dtype=jnp.float32)
    params = init_params(kp, M, H, O)

    y = jax.jit(delta_t_rnn_forward)(x, params)
    jax.block_until_ready(y)
    assert y.shape == (N, T)

    y_ref = delta_t_rnn_reference(x, params)
    err = float(jnp.max(jnp.abs(y - y_ref)))
    # Tolerance allows for TPU matmul-precision differences between the
    # Mosaic in-kernel dots and the XLA reference path.
    assert jnp.allclose(y, y_ref, atol=5e-3, rtol=5e-3), f"mismatch: max abs err={err}"

    print("KERNEL_OK")
</pallas_src>

<mosaic_0001>
module attributes {stable_mosaic.version = 11 : i64} {
  func.func @_delta_t_rnn_kernel(%arg0: i32, %arg1: i32, %arg2: memref<8x8x8xf32, #tpu.memory_space<vmem>>, %arg3: memref<8x128xf32, #tpu.memory_space<vmem>>, %arg4: memref<128x128xf32, #tpu.memory_space<vmem>>, %arg5: memref<1x128xf32, #tpu.memory_space<vmem>>, %arg6: memref<1x128xf32, #tpu.memory_space<vmem>>, %arg7: memref<8x8xf32, #tpu.memory_space<vmem>>, %arg8: memref<8x128xf32, #tpu.memory_space<vmem>>, %arg9: memref<8x8x128xf32, #tpu.memory_space<vmem>>) attributes {dimension_semantics = [#tpu.dimension_semantics<parallel>, #tpu.dimension_semantics<arbitrary>], iteration_bounds = array<i64: 1, 1>, scalar_prefetch = 0 : i64, scratch_operands = 2 : i64, tpu.core_type = #tpu.core_type<tc>, window_params = [{transform_indices = @transform_0, window_bounds = array<i64: 8, 8, 8>}, {pipeline_mode = #tpu.pipeline_mode<synchronous>, transform_indices = @transform_1, window_bounds = array<i64: 8, 128>}, {pipeline_mode = #tpu.pipeline_mode<synchronous>, transform_indices = @transform_2, window_bounds = array<i64: 128, 128>}, {pipeline_mode = #tpu.pipeline_mode<synchronous>, transform_indices = @transform_3, window_bounds = array<i64: 1, 128>}, {pipeline_mode = #tpu.pipeline_mode<synchronous>, transform_indices = @transform_4, window_bounds = array<i64: 1, 128>}, {transform_indices = @transform_5, window_bounds = array<i64: 8, 8>}]} {
    %c0_i32 = arith.constant 0 : i32
    %0 = arith.cmpi eq, %arg1, %c0_i32 : i32
    %1 = arith.extui %0 : i1 to i32
    %c0_i32_0 = arith.constant 0 : i32
    %2 = arith.cmpi ne, %1, %c0_i32_0 : i32
    scf.if %2 {
      %cst_59 = arith.constant 0.000000e+00 : f32
      %120 = vector.broadcast %cst_59 : f32 to vector<8x128xf32>
      %c0_60 = arith.constant 0 : index
      %c0_61 = arith.constant 0 : index
      %121 = vector.load %arg8[%c0_60, %c0_61] : memref<8x128xf32, #tpu.memory_space<vmem>>, vector<8x128xf32>
      tpu.vector_store %arg8[%c0_60, %c0_61], %120 {strides = array<i32>} : memref<8x128xf32, #tpu.memory_space<vmem>>, vector<8x128xf32>,
    } else {
    }
    %c0 = arith.constant 0 : index
    %c0_1 = arith.constant 0 : index
    %c0_2 = arith.constant 0 : index
    %3 = vector.load %arg2[%c0, %c0_1, %c0_2] : memref<8x8x8xf32, #tpu.memory_space<vmem>>, vector<8x8x8xf32>
    %4 = vector.shape_cast %3 : vector<8x8x8xf32> to vector<64x8xf32>
    %c0_3 = arith.constant 0 : index
    %c0_4 = arith.constant 0 : index
    %5 = vector.load %arg3[%c0_3, %c0_4] : memref<8x128xf32, #tpu.memory_space<vmem>>, vector<8x128xf32>
    %cst = arith.constant dense<0.000000e+00> : vector<64x128xf32>
    %6 = tpu.matmul %4, %5, %cst {dimension_numbers = #tpu.dot_dimension_numbers<[1], [0], [0], [1], [0, 0, 1, 1], [], []>} : vector<64x8xf32>, vector<8x128xf32>, vector<64x128xf32> -> vector<64x128xf32>
    %c0_5 = arith.constant 0 : index
    %c0_6 = arith.constant 0 : index
    %7 = vector.load %arg5[%c0_5, %c0_6] : memref<1x128xf32, #tpu.memory_space<vmem>>, vector<1x128xf32>
    %8 = vector.broadcast %7 : vector<1x128xf32> to vector<64x128xf32>
    %9 = arith.addf %6, %8 : vector<64x128xf32>
    %10 = vector.shape_cast %9 : vector<64x128xf32> to vector<8x8x128xf32>
    %c0_7 = arith.constant 0 : index
    %c0_8 = arith.constant 0 : index
    %c0_9 = arith.constant 0 : index
    %11 = vector.load %arg9[%c0_7, %c0_8, %c0_9] : memref<8x8x128xf32, #tpu.memory_space<vmem>>, vector<8x8x128xf32>
    tpu.vector_store %arg9[%c0_7, %c0_8, %c0_9], %10 {strides = array<i32>} : memref<8x8x128xf32, #tpu.memory_space<vmem>>, vector<8x8x128xf32>,
    %c0_10 = arith.constant 0 : index
    %c0_11 = arith.constant 0 : index
    %12 = vector.load %arg4[%c0_10, %c0_11] : memref<128x128xf32, #tpu.memory_space<vmem>>, vector<128x128xf32>
    %c0_12 = arith.constant 0 : index
    %c0_13 = arith.constant 0 : index
    %13 = vector.load %arg6[%c0_12, %c0_13] : memref<1x128xf32, #tpu.memory_space<vmem>>, vector<1x128xf32>
    %c0_14 = arith.constant 0 : index
    %c0_15 = arith.constant 0 : index
    %14 = vector.load %arg8[%c0_14, %c0_15] : memref<8x128xf32, #tpu.memory_space<vmem>>, vector<8x128xf32>
    %c0_i32_16 = arith.constant 0 : i32
    %15 = arith.index_cast %c0_i32_16 : i32 to index
    %c0_17 = arith.constant 0 : index
    %c0_18 = arith.constant 0 : index
    %16 = vector.load %arg9[%15, %c0_17, %c0_18] : memref<8x8x128xf32, #tpu.memory_space<vmem>>, vector<1x8x128xf32>
    %17 = vector.shape_cast %16 : vector<1x8x128xf32> to vector<8x128xf32>
    %cst_19 = arith.constant dense<0.000000e+00> : vector<8x128xf32>
    %18 = tpu.matmul %14, %12, %cst_19 {dimension_numbers = #tpu.dot_dimension_numbers<[1], [0], [0], [1], [0, 0, 1, 1], [], []>} : vector<8x128xf32>, vector<128x128xf32>, vector<8x128xf32> -> vector<8x128xf32>
    %19 = arith.addf %17, %18 : vector<8x128xf32>
    %20 = math.tanh %19 : vector<8x128xf32>
    %21 = vector.broadcast %13 : vector<1x128xf32> to vector<8x128xf32>
    %22 = arith.mulf %20, %21 : vector<8x128xf32>
    %cst_20 = arith.constant dense<0.000000e+00> : vector<8xf32>
    %23 = vector.multi_reduction <add>, %22, %cst_20 [1] : vector<8x128xf32> to vector<8xf32>
    %24 = arith.index_cast %c0_i32_16 : i32 to index
    %c0_21 = arith.constant 0 : index
    %25 = vector.load %arg7[%24, %c0_21] : memref<8x8xf32, #tpu.memory_space<vmem>>, vector<1x8xf32>
    %26 = vector.shape_cast %25 : vector<1x8xf32> to vector<8xf32>
    %27 = vector.shape_cast %23 : vector<8xf32> to vector<1x8xf32>
    tpu.vector_store %arg7[%24, %c0_21], %27 {strides = array<i32>} : memref<8x8xf32, #tpu.memory_space<vmem>>, vector<1x8xf32>,
    %c1_i32 = arith.constant 1 : i32
    %28 = arith.index_cast %c1_i32 : i32 to index
    %c0_22 = arith.constant 0 : index
    %c0_23 = arith.constant 0 : index
    %29 = vector.load %arg9[%28, %c0_22, %c0_23] : memref<8x8x128xf32, #tpu.memory_space<vmem>>, vector<1x8x128xf32>
    %30 = vector.shape_cast %29 : vector<1x8x128xf32> to vector<8x128xf32>
    %cst_24 = arith.constant dense<0.000000e+00> : vector<8x128xf32>
    %31 = tpu.matmul %20, %12, %cst_24 {dimension_numbers = #tpu.dot_dimension_numbers<[1], [0], [0], [1], [0, 0, 1, 1], [], []>} : vector<8x128xf32>, vector<128x128xf32>, vector<8x128xf32> -> vector<8x128xf32>
    %32 = arith.addf %30, %31 : vector<8x128xf32>
    %33 = math.tanh %32 : vector<8x128xf32>
    %34 = vector.broadcast %13 : vector<1x128xf32> to vector<8x128xf32>
    %35 = arith.mulf %33, %34 : vector<8x128xf32>
    %cst_25 = arith.constant dense<0.000000e+00> : vector<8xf32>
    %36 = vector.multi_reduction <add>, %35, %cst_25 [1] : vector<8x128xf32> to vector<8xf32>
    %37 = arith.index_cast %c1_i32 : i32 to index
    %c0_26 = arith.constant 0 : index
    %38 = vector.load %arg7[%37, %c0_26] : memref<8x8xf32, #tpu.memory_space<vmem>>, vector<1x8xf32>
    %39 = vector.shape_cast %38 : vector<1x8xf32> to vector<8xf32>
    %40 = vector.shape_cast %36 : vector<8xf32> to vector<1x8xf32>
    tpu.vector_store %arg7[%37, %c0_26], %40 {strides = array<i32>} : memref<8x8xf32, #tpu.memory_space<vmem>>, vector<1x8xf32>,
    %c2_i32 = arith.constant 2 : i32
    %41 = arith.index_cast %c2_i32 : i32 to index
    %c0_27 = arith.constant 0 : index
    %c0_28 = arith.constant 0 : index
    %42 = vector.load %arg9[%41, %c0_27, %c0_28] : memref<8x8x128xf32, #tpu.memory_space<vmem>>, vector<1x8x128xf32>
    %43 = vector.shape_cast %42 : vector<1x8x128xf32> to vector<8x128xf32>
    %cst_29 = arith.constant dense<0.000000e+00> : vector<8x128xf32>
    %44 = tpu.matmul %33, %12, %cst_29 {dimension_numbers = #tpu.dot_dimension_numbers<[1], [0], [0], [1], [0, 0, 1, 1], [], []>} : vector<8x128xf32>, vector<128x128xf32>, vector<8x128xf32> -> vector<8x128xf32>
    %45 = arith.addf %43, %44 : vector<8x128xf32>
    %46 = math.tanh %45 : vector<8x128xf32>
    %47 = vector.broadcast %13 : vector<1x128xf32> to vector<8x128xf32>
    %48 = arith.mulf %46, %47 : vector<8x128xf32>
    %cst_30 = arith.constant dense<0.000000e+00> : vector<8xf32>
    %49 = vector.multi_reduction <add>, %48, %cst_30 [1] : vector<8x128xf32> to vector<8xf32>
    %50 = arith.index_cast %c2_i32 : i32 to index
    %c0_31 = arith.constant 0 : index
    %51 = vector.load %arg7[%50, %c0_31] : memref<8x8xf32, #tpu.memory_space<vmem>>, vector<1x8xf32>
    %52 = vector.shape_cast %51 : vector<1x8xf32> to vector<8xf32>
    %53 = vector.shape_cast %49 : vector<8xf32> to vector<1x8xf32>
    tpu.vector_store %arg7[%50, %c0_31], %53 {strides = array<i32>} : memref<8x8xf32, #tpu.memory_space<vmem>>, vector<1x8xf32>,
    %c3_i32 = arith.constant 3 : i32
    %54 = arith.index_cast %c3_i32 : i32 to index
    %c0_32 = arith.constant 0 : index
    %c0_33 = arith.constant 0 : index
    %55 = vector.load %arg9[%54, %c0_32, %c0_33] : memref<8x8x128xf32, #tpu.memory_space<vmem>>, vector<1x8x128xf32>
    %56 = vector.shape_cast %55 : vector<1x8x128xf32> to vector<8x128xf32>
    %cst_34 = arith.constant dense<0.000000e+00> : vector<8x128xf32>
    %57 = tpu.matmul %46, %12, %cst_34 {dimension_numbers = #tpu.dot_dimension_numbers<[1], [0], [0], [1], [0, 0, 1, 1], [], []>} : vector<8x128xf32>, vector<128x128xf32>, vector<8x128xf32> -> vector<8x128xf32>
    %58 = arith.addf %56, %57 : vector<8x128xf32>
    %59 = math.tanh %58 : vector<8x128xf32>
    %60 = vector.broadcast %13 : vector<1x128xf32> to vector<8x128xf32>
    %61 = arith.mulf %59, %60 : vector<8x128xf32>
    %cst_35 = arith.constant dense<0.000000e+00> : vector<8xf32>
    %62 = vector.multi_reduction <add>, %61, %cst_35 [1] : vector<8x128xf32> to vector<8xf32>
    %63 = arith.index_cast %c3_i32 : i32 to index
    %c0_36 = arith.constant 0 : index
    %64 = vector.load %arg7[%63, %c0_36] : memref<8x8xf32, #tpu.memory_space<vmem>>, vector<1x8xf32>
    %65 = vector.shape_cast %64 : vector<1x8xf32> to vector<8xf32>
    %66 = vector.shape_cast %62 : vector<8xf32> to vector<1x8xf32>
    tpu.vector_store %arg7[%63, %c0_36], %66 {strides = array<i32>} : memref<8x8xf32, #tpu.memory_space<vmem>>, vector<1x8xf32>,
    %c4_i32 = arith.constant 4 : i32
    %67 = arith.index_cast %c4_i32 : i32 to index
    %c0_37 = arith.constant 0 : index
    %c0_38 = arith.constant 0 : index
    %68 = vector.load %arg9[%67, %c0_37, %c0_38] : memref<8x8x128xf32, #tpu.memory_space<vmem>>, vector<1x8x128xf32>
    %69 = vector.shape_cast %68 : vector<1x8x128xf32> to vector<8x128xf32>
    %cst_39 = arith.constant dense<0.000000e+00> : vector<8x128xf32>
    %70 = tpu.matmul %59, %12, %cst_39 {dimension_numbers = #tpu.dot_dimension_numbers<[1], [0], [0], [1], [0, 0, 1, 1], [], []>} : vector<8x128xf32>, vector<128x128xf32>, vector<8x128xf32> -> vector<8x128xf32>
    %71 = arith.addf %69, %70 : vector<8x128xf32>
    %72 = math.tanh %71 : vector<8x128xf32>
    %73 = vector.broadcast %13 : vector<1x128xf32> to vector<8x128xf32>
    %74 = arith.mulf %72, %73 : vector<8x128xf32>
    %cst_40 = arith.constant dense<0.000000e+00> : vector<8xf32>
    %75 = vector.multi_reduction <add>, %74, %cst_40 [1] : vector<8x128xf32> to vector<8xf32>
    %76 = arith.index_cast %c4_i32 : i32 to index
    %c0_41 = arith.constant 0 : index
    %77 = vector.load %arg7[%76, %c0_41] : memref<8x8xf32, #tpu.memory_space<vmem>>, vector<1x8xf32>
    %78 = vector.shape_cast %77 : vector<1x8xf32> to vector<8xf32>
    %79 = vector.shape_cast %75 : vector<8xf32> to vector<1x8xf32>
    tpu.vector_store %arg7[%76, %c0_41], %79 {strides = array<i32>} : memref<8x8xf32, #tpu.memory_space<vmem>>, vector<1x8xf32>,
    %c5_i32 = arith.constant 5 : i32
    %80 = arith.index_cast %c5_i32 : i32 to index
    %c0_42 = arith.constant 0 : index
    %c0_43 = arith.constant 0 : index
    %81 = vector.load %arg9[%80, %c0_42, %c0_43] : memref<8x8x128xf32, #tpu.memory_space<vmem>>, vector<1x8x128xf32>
    %82 = vector.shape_cast %81 : vector<1x8x128xf32> to vector<8x128xf32>
    %cst_44 = arith.constant dense<0.000000e+00> : vector<8x128xf32>
    %83 = tpu.matmul %72, %12, %cst_44 {dimension_numbers = #tpu.dot_dimension_numbers<[1], [0], [0], [1], [0, 0, 1, 1], [], []>} : vector<8x128xf32>, vector<128x128xf32>, vector<8x128xf32> -> vector<8x128xf32>
    %84 = arith.addf %82, %83 : vector<8x128xf32>
    %85 = math.tanh %84 : vector<8x128xf32>
    %86 = vector.broadcast %13 : vector<1x128xf32> to vector<8x128xf32>
    %87 = arith.mulf %85, %86 : vector<8x128xf32>
    %cst_45 = arith.constant dense<0.000000e+00> : vector<8xf32>
    %88 = vector.multi_reduction <add>, %87, %cst_45 [1] : vector<8x128xf32> to vector<8xf32>
    %89 = arith.index_cast %c5_i32 : i32 to index
    %c0_46 = arith.constant 0 : index
    %90 = vector.load %arg7[%89, %c0_46] : memref<8x8xf32, #tpu.memory_space<vmem>>, vector<1x8xf32>
    %91 = vector.shape_cast %90 : vector<1x8xf32> to vector<8xf32>
    %92 = vector.shape_cast %88 : vector<8xf32> to vector<1x8xf32>
    tpu.vector_store %arg7[%89, %c0_46], %92 {strides = array<i32>} : memref<8x8xf32, #tpu.memory_space<vmem>>, vector<1x8xf32>,
    %c6_i32 = arith.constant 6 : i32
    %93 = arith.index_cast %c6_i32 : i32 to index
    %c0_47 = arith.constant 0 : index
    %c0_48 = arith.constant 0 : index
    %94 = vector.load %arg9[%93, %c0_47, %c0_48] : memref<8x8x128xf32, #tpu.memory_space<vmem>>, vector<1x8x128xf32>
    %95 = vector.shape_cast %94 : vector<1x8x128xf32> to vector<8x128xf32>
    %cst_49 = arith.constant dense<0.000000e+00> : vector<8x128xf32>
    %96 = tpu.matmul %85, %12, %cst_49 {dimension_numbers = #tpu.dot_dimension_numbers<[1], [0], [0], [1], [0, 0, 1, 1], [], []>} : vector<8x128xf32>, vector<128x128xf32>, vector<8x128xf32> -> vector<8x128xf32>
    %97 = arith.addf %95, %96 : vector<8x128xf32>
    %98 = math.tanh %97 : vector<8x128xf32>
    %99 = vector.broadcast %13 : vector<1x128xf32> to vector<8x128xf32>
    %100 = arith.mulf %98, %99 : vector<8x128xf32>
    %cst_50 = arith.constant dense<0.000000e+00> : vector<8xf32>
    %101 = vector.multi_reduction <add>, %100, %cst_50 [1] : vector<8x128xf32> to vector<8xf32>
    %102 = arith.index_cast %c6_i32 : i32 to index
    %c0_51 = arith.constant 0 : index
    %103 = vector.load %arg7[%102, %c0_51] : memref<8x8xf32, #tpu.memory_space<vmem>>, vector<1x8xf32>
    %104 = vector.shape_cast %103 : vector<1x8xf32> to vector<8xf32>
    %105 = vector.shape_cast %101 : vector<8xf32> to vector<1x8xf32>
    tpu.vector_store %arg7[%102, %c0_51], %105 {strides = array<i32>} : memref<8x8xf32, #tpu.memory_space<vmem>>, vector<1x8xf32>,
    %c7_i32 = arith.constant 7 : i32
    %106 = arith.index_cast %c7_i32 : i32 to index
    %c0_52 = arith.constant 0 : index
    %c0_53 = arith.constant 0 : index
    %107 = vector.load %arg9[%106, %c0_52, %c0_53] : memref<8x8x128xf32, #tpu.memory_space<vmem>>, vector<1x8x128xf32>
    %108 = vector.shape_cast %107 : vector<1x8x128xf32> to vector<8x128xf32>
    %cst_54 = arith.constant dense<0.000000e+00> : vector<8x128xf32>
    %109 = tpu.matmul %98, %12, %cst_54 {dimension_numbers = #tpu.dot_dimension_numbers<[1], [0], [0], [1], [0, 0, 1, 1], [], []>} : vector<8x128xf32>, vector<128x128xf32>, vector<8x128xf32> -> vector<8x128xf32>
    %110 = arith.addf %108, %109 : vector<8x128xf32>
    %111 = math.tanh %110 : vector<8x128xf32>
    %112 = vector.broadcast %13 : vector<1x128xf32> to vector<8x128xf32>
    %113 = arith.mulf %111, %112 : vector<8x128xf32>
    %cst_55 = arith.constant dense<0.000000e+00> : vector<8xf32>
    %114 = vector.multi_reduction <add>, %113, %cst_55 [1] : vector<8x128xf32> to vector<8xf32>
    %115 = arith.index_cast %c7_i32 : i32 to index
    %c0_56 = arith.constant 0 : index
    %116 = vector.load %arg7[%115, %c0_56] : memref<8x8xf32, #tpu.memory_space<vmem>>, vector<1x8xf32>
    %117 = vector.shape_cast %116 : vector<1x8xf32> to vector<8xf32>
    %118 = vector.shape_cast %114 : vector<8xf32> to vector<1x8xf32>
    tpu.vector_store %arg7[%115, %c0_56], %118 {strides = array<i32>} : memref<8x8xf32, #tpu.memory_space<vmem>>, vector<1x8xf32>,
    %c8_i32 = arith.constant 8 : i32
    %c0_57 = arith.constant 0 : index
    %c0_58 = arith.constant 0 : index
    %119 = vector.load %arg8[%c0_57, %c0_58] : memref<8x128xf32, #tpu.memory_space<vmem>>, vector<8x128xf32>
    tpu.vector_store %arg8[%c0_57, %c0_58], %111 {strides = array<i32>} : memref<8x128xf32, #tpu.memory_space<vmem>>, vector<8x128xf32>,
    return
  }
  func.func @transform_0(%arg0: i32, %arg1: i32) -> (i32, i32, i32) {
    %c0_i32 = arith.constant 0 : i32
    %c0_i32_0 = arith.constant 0 : i32
    return %arg1, %arg0, %c0_i32 : i32, i32, i32
  }
  func.func @transform_1(%arg0: i32, %arg1: i32) -> (i32, i32) {
    %c0_i32 = arith.constant 0 : i32
    %c0_i32_0 = arith.constant 0 : i32
    %c0_i32_1 = arith.constant 0 : i32
    return %c0_i32, %c0_i32_0 : i32, i32
  }
  func.func @transform_2(%arg0: i32, %arg1: i32) -> (i32, i32) {
    %c0_i32 = arith.constant 0 : i32
    %c0_i32_0 = arith.constant 0 : i32
    %c0_i32_1 = arith.constant 0 : i32
    return %c0_i32, %c0_i32_0 : i32, i32
  }
  func.func @transform_3(%arg0: i32, %arg1: i32) -> (i32, i32) {
    %c0_i32 = arith.constant 0 : i32
    %c0_i32_0 = arith.constant 0 : i32
    %c0_i32_1 = arith.constant 0 : i32
    return %c0_i32, %c0_i32_0 : i32, i32
  }
  func.func @transform_4(%arg0: i32, %arg1: i32) -> (i32, i32) {
    %c0_i32 = arith.constant 0 : i32
    %c0_i32_0 = arith.constant 0 : i32
    %c0_i32_1 = arith.constant 0 : i32
    return %c0_i32, %c0_i32_0 : i32, i32
  }
  func.func @transform_5(%arg0: i32, %arg1: i32) -> (i32, i32) {
    %c0_i32 = arith.constant 0 : i32
    return %arg1, %arg0 : i32, i32
  }
}

</mosaic_0001>

<bundles_post_ra>
// kernel: delta_t_rnn_forward.1
= control target key start
LH: loop header
LB: loop body
LE: loop exit
PB: predicated region body
PF: predicated region fallthrough
CT: control target
= control target key end

     0   :  { %vm38_vm0 = vcmask 64512   ;;  %v415_v18 = vmov 0.0   ;;  %v160_v28 = vlaneseq  ;;  %vm164_vm1 = vcmask 57344   ;;  %s757_s2 = inlined_call_operand.vmem [shape: f32[128,128], index: 2, kind: input, shape index: {}]   ;;  %s758_s1 = inlined_call_operand.vmem [shape: f32[8,128], index: 1, kind: input, shape index: {}]   ;;  %s759_s0 = inlined_call_operand.vmem [shape: f32[8,8,8], index: 0, kind: input, shape index: {}]   ;;  %s760_s3 = inlined_call_operand.vmem [shape: f32[1,128], index: 3, kind: input, shape index: {}]   ;;  %s761_s4 = inlined_call_operand.vmem [shape: f32[1,128], index: 4, kind: input, shape index: {}]   ;;  %s762_s5 = inlined_call_operand.vmem [shape: f32[8,8], index: 5, kind: output, shape index: {}]  }
   0x1   :  { %v449_v0 = vld [vmem:[%s757_s2 + $0x78] sm:$0xff]  ;;  %v454_v1 = vld [vmem:[%s757_s2 + $0x70] sm:$0xff]  ;;  %v461_v2 = vld [vmem:[%s757_s2 + $0x68] sm:$0xff] }
   0x2   :  { %131 = vmatpush.msra.mxu1 %v449_v0  ;;  %168 = vmatpush.msra.mxu2 %v449_v0  ;;  %v469_v3 = vld [vmem:[%s757_s2 + $0x60] sm:$0xff]  ;;  %v482_v6 = vld [vmem:[%s757_s2 + $0x58] sm:$0xff]  ;;  %v491_v7 = vld [vmem:[%s757_s2 + $0x50] sm:$0xff]  ;;  %v681_v30 = vand.u32 127, %v160_v28 }
   0x3   :  { %199 = vmatpush.msra.mxu3 %v449_v0  ;;  %v33_v4 = vld [vmem:[%s758_s1] sm:$0xff]  ;;  %v500_v8 = vld [vmem:[%s757_s2 + $0x48] sm:$0xff]  ;;  %v518_v10 = vld [vmem:[%s757_s2 + $0x38] sm:$0xff] }
   0x4   :  { %132 = vmatpush.msra.mxu1 %v454_v1  ;;  %169 = vmatpush.msra.mxu2 %v454_v1  ;;  %v25_v5 = vld [vmem:[%s759_s0] sm:$0xff]  ;;  %v527_v11 = vld [vmem:[%s757_s2 + $0x30] sm:$0xff]  ;;  %v536_v12 = vld [vmem:[%s757_s2 + $0x28] sm:$0xff] }
   0x5   :  { %200 = vmatpush.msra.mxu3 %v454_v1  ;;  %78 = vmatpush.msra.mxu0 %v33_v4  ;;  %v509_v9 = vld [vmem:[%s757_s2 + $0x40] sm:$0xff]  ;;  %v554_v14 = vld [vmem:[%s757_s2 + $0x18] sm:$0xff]  ;;  %v563_v15 = vld [vmem:[%s757_s2 + $0x10] sm:$0xff] }
   0x6   :  { %133 = vmatpush.msra.mxu1 %v461_v2  ;;  %388 = vmatmul.msk.f32.vlgmr.msra.gmra.mxu0 %vm38_vm0, %v25_v5  ;;  %v545_v13 = vld [vmem:[%s757_s2 + $0x20] sm:$0xff]  ;;  %v572_v16 = vld [vmem:[%s757_s2 + $0x8] sm:$0xff]  ;;  %v27_v29 = vld [vmem:[%s759_s0 + $0x10] sm:$0xff] }
   0x7   :  { %170 = vmatpush.msra.mxu2 %v461_v2  ;;  %201 = vmatpush.msra.mxu3 %v461_v2  ;;  %v581_v17 = vld [vmem:[%s757_s2] sm:$0xff]  ;;  %v26_v19 = vld [vmem:[%s759_s0 + $0x8] sm:$0xff]  ;;  %v28_v39 = vld [vmem:[%s759_s0 + $0x18] sm:$0xff] }
   0x8   :  { %134 = vmatpush.msra.mxu1 %v469_v3  ;;  %323 = vmatpush.msrb.mxu0 %v449_v0  ;;  %v668_v20 = vld [vmem:[%s760_s3] ss:$0 sm:$0xff]  ;;  %v30_v57 = vld [vmem:[%s759_s0 + $0x28] sm:$0xff] }
   0x9   :  { %171 = vmatpush.msra.mxu2 %v469_v3  ;;  %202 = vmatpush.msra.mxu3 %v469_v3  ;;  %v674_v25 = vld [vmem:[%s761_s4] ss:$0 sm:$0xff] }
   0xa   :  { %135 = vmatpush.msra.mxu1 %v482_v6  ;;  %324 = vmatpush.msrb.mxu0 %v454_v1  ;;  %v29_v48 = vld [vmem:[%s759_s0 + $0x20] sm:$0xff] }
   0xb   :  { %172 = vmatpush.msra.mxu2 %v482_v6  ;;  %203 = vmatpush.msra.mxu3 %v482_v6 }
   0xc   :  { %136 = vmatpush.msra.mxu1 %v491_v7  ;;  %325 = vmatpush.msrb.mxu0 %v461_v2 }
   0xd   :  { %173 = vmatpush.msra.mxu2 %v491_v7  ;;  %204 = vmatpush.msra.mxu3 %v491_v7 }
   0xe   :  { %137 = vmatpush.msra.mxu1 %v500_v8  ;;  %326 = vmatpush.msrb.mxu0 %v469_v3 }
   0xf   :  { %174 = vmatpush.msra.mxu2 %v500_v8  ;;  %205 = vmatpush.msra.mxu3 %v500_v8 }
  0x10   :  { %138 = vmatpush.msra.mxu1 %v509_v9  ;;  %327 = vmatpush.msrb.mxu0 %v482_v6 }
  0x11   :  { %175 = vmatpush.msra.mxu2 %v509_v9  ;;  %206 = vmatpush.msra.mxu3 %v509_v9 }
  0x12   :  { %139 = vmatpush.msra.mxu1 %v518_v10  ;;  %328 = vmatpush.msrb.mxu0 %v491_v7 }
  0x13   :  { %176 = vmatpush.msra.mxu2 %v518_v10  ;;  %207 = vmatpush.msra.mxu3 %v518_v10 }
  0x14   :  { %140 = vmatpush.msra.mxu1 %v527_v11  ;;  %329 = vmatpush.msrb.mxu0 %v500_v8 }
  0x15   :  { %177 = vmatpush.msra.mxu2 %v527_v11  ;;  %208 = vmatpush.msra.mxu3 %v527_v11 }
  0x16   :  { %141 = vmatpush.msra.mxu1 %v536_v12  ;;  %330 = vmatpush.msrb.mxu0 %v509_v9 }
  0x17   :  { %178 = vmatpush.msra.mxu2 %v536_v12  ;;  %209 = vmatpush.msra.mxu3 %v536_v12 }
  0x18   :  { %142 = vmatpush.msra.mxu1 %v545_v13  ;;  %331 = vmatpush.msrb.mxu0 %v518_v10 }
  0x19   :  { %179 = vmatpush.msra.mxu2 %v545_v13  ;;  %210 = vmatpush.msra.mxu3 %v545_v13 }
  0x1a   :  { %143 = vmatpush.msra.mxu1 %v554_v14  ;;  %332 = vmatpush.msrb.mxu0 %v527_v11 }
  0x1b   :  { %180 = vmatpush.msra.mxu2 %v554_v14  ;;  %211 = vmatpush.msra.mxu3 %v554_v14 }
  0x1c   :  { %144 = vmatpush.msra.mxu1 %v563_v15  ;;  %333 = vmatpush.msrb.mxu0 %v536_v12 }
  0x1d   :  { %181 = vmatpush.msra.mxu2 %v563_v15  ;;  %212 = vmatpush.msra.mxu3 %v563_v15 }
  0x1e   :  { %145 = vmatpush.msra.mxu1 %v572_v16  ;;  %334 = vmatpush.msrb.mxu0 %v545_v13 }
  0x1f   :  { %182 = vmatpush.msra.mxu2 %v572_v16  ;;  %213 = vmatpush.msra.mxu3 %v572_v16 }
  0x20   :  { %146 = vmatpush.msra.mxu1 %v581_v17  ;;  %335 = vmatpush.msrb.mxu0 %v554_v14 }
  0x21   :  { %147 = vmatmul.f32.vlgmr.msra.gmra.mxu1 %v415_v18  ;;  %183 = vmatpush.msra.mxu2 %v581_v17 }
  0x22   :  { %214 = vmatpush.msra.mxu3 %v581_v17  ;;  %230 = vmatpush.msrb.mxu1 %v449_v0 }
  0x23   :  { %261 = vmatpush.msrb.mxu2 %v449_v0  ;;  %336 = vmatpush.msrb.mxu0 %v563_v15 }
  0x24   :  { %292 = vmatpush.msrb.mxu3 %v449_v0  ;;  %231 = vmatpush.msrb.mxu1 %v454_v1 }
  0x25   :  { %262 = vmatpush.msrb.mxu2 %v454_v1  ;;  %337 = vmatpush.msrb.mxu0 %v572_v16 }
  0x26   :  { %293 = vmatpush.msrb.mxu3 %v454_v1  ;;  %232 = vmatpush.msrb.mxu1 %v461_v2 }
  0x27   :  { %263 = vmatpush.msrb.mxu2 %v461_v2  ;;  %338 = vmatpush.msrb.mxu0 %v581_v17 }
  0x28   :  { %294 = vmatpush.msrb.mxu3 %v461_v2  ;;  %233 = vmatpush.msrb.mxu1 %v469_v3 }
  0x29   :  { %264 = vmatpush.msrb.mxu2 %v469_v3  ;;  %389 = vmatmul.msk.f32.gmra.mxu0 %vm38_vm0, %v26_v19 }
  0x2a   :  { %295 = vmatpush.msrb.mxu3 %v469_v3  ;;  %234 = vmatpush.msrb.mxu1 %v482_v6 }
  0x2b   :  { %265 = vmatpush.msrb.mxu2 %v482_v6 }
  0x2c   :  { %296 = vmatpush.msrb.mxu3 %v482_v6  ;;  %235 = vmatpush.msrb.mxu1 %v491_v7 }
  0x2d   :  { %266 = vmatpush.msrb.mxu2 %v491_v7 }
  0x2e   :  { %297 = vmatpush.msrb.mxu3 %v491_v7  ;;  %236 = vmatpush.msrb.mxu1 %v500_v8 }
  0x2f   :  { %267 = vmatpush.msrb.mxu2 %v500_v8 }
  0x30   :  { %298 = vmatpush.msrb.mxu3 %v500_v8  ;;  %237 = vmatpush.msrb.mxu1 %v509_v9 }
  0x31   :  { %268 = vmatpush.msrb.mxu2 %v509_v9  ;;  %390 = vmatmul.msk.f32.gmra.mxu0 %vm38_vm0, %v27_v29 }
  0x32   :  { %299 = vmatpush.msrb.mxu3 %v509_v9  ;;  %238 = vmatpush.msrb.mxu1 %v518_v10 }
  0x33   :  { %269 = vmatpush.msrb.mxu2 %v518_v10 }
  0x34   :  { %300 = vmatpush.msrb.mxu3 %v518_v10  ;;  %239 = vmatpush.msrb.mxu1 %v527_v11 }
  0x35   :  { %270 = vmatpush.msrb.mxu2 %v527_v11 }
  0x36   :  { %301 = vmatpush.msrb.mxu3 %v527_v11  ;;  %240 = vmatpush.msrb.mxu1 %v536_v12 }
  0x37   :  { %271 = vmatpush.msrb.mxu2 %v536_v12 }
  0x38   :  { %302 = vmatpush.msrb.mxu3 %v536_v12  ;;  %241 = vmatpush.msrb.mxu1 %v545_v13 }
  0x39   :  { %272 = vmatpush.msrb.mxu2 %v545_v13  ;;  %391 = vmatmul.msk.f32.gmra.mxu0 %vm38_vm0, %v28_v39 }
  0x3a   :  { %303 = vmatpush.msrb.mxu3 %v545_v13  ;;  %242 = vmatpush.msrb.mxu1 %v554_v14 }
  0x3b   :  { %273 = vmatpush.msrb.mxu2 %v554_v14 }
  0x3c   :  { %304 = vmatpush.msrb.mxu3 %v554_v14  ;;  %243 = vmatpush.msrb.mxu1 %v563_v15 }
  0x3d   :  { %274 = vmatpush.msrb.mxu2 %v563_v15 }
  0x3e   :  { %305 = vmatpush.msrb.mxu3 %v563_v15  ;;  %244 = vmatpush.msrb.mxu1 %v572_v16 }
  0x3f   :  { %275 = vmatpush.msrb.mxu2 %v572_v16 }
  0x40   :  { %306 = vmatpush.msrb.mxu3 %v572_v16  ;;  %245 = vmatpush.msrb.mxu1 %v581_v17 }
  0x41   :  { %276 = vmatpush.msrb.mxu2 %v581_v17  ;;  %392 = vmatmul.msk.f32.gmra.mxu0 %vm38_vm0, %v29_v48 }
  0x42   :  { %307 = vmatpush.msrb.mxu3 %v581_v17  ;;  %354 = vmatpush.msra.mxu1 %v449_v0 }
  0x44   :  { %355 = vmatpush.msra.mxu1 %v454_v1 }
  0x46   :  { %356 = vmatpush.msra.mxu1 %v461_v2  ;;  %v31_v2 = vld [vmem:[%s759_s0 + $0x30] sm:$0xff] }
  0x48   :  { %357 = vmatpush.msra.mxu1 %v469_v3  ;;  %v32_v3 = vld [vmem:[%s759_s0 + $0x38] sm:$0xff] }
  0x49   :  { %393 = vmatmul.msk.f32.gmra.mxu0 %vm38_vm0, %v30_v57 }
  0x4a   :  { %358 = vmatpush.msra.mxu1 %v482_v6 }
  0x4c   :  { %359 = vmatpush.msra.mxu1 %v491_v7 }
  0x4e   :  { %360 = vmatpush.msra.mxu1 %v500_v8 }
  0x50   :  { %361 = vmatpush.msra.mxu1 %v509_v9 }
  0x51   :  { %394 = vmatmul.msk.f32.gmra.mxu0 %vm38_vm0, %v31_v2 }
  0x52   :  { %362 = vmatpush.msra.mxu1 %v518_v10 }
  0x54   :  { %363 = vmatpush.msra.mxu1 %v527_v11 }
  0x56   :  { %364 = vmatpush.msra.mxu1 %v536_v12 }
  0x58   :  { %365 = vmatpush.msra.mxu1 %v545_v13 }
  0x59   :  { %395 = vmatmul.msk.f32.gmra.mxu0 %vm38_vm0, %v32_v3 }
  0x5a   :  { %366 = vmatpush.msra.mxu1 %v554_v14 }
  0x5c   :  { %367 = vmatpush.msra.mxu1 %v563_v15 }
  0x5e   :  { %368 = vmatpush.msra.mxu1 %v572_v16 }
  0x60   :  { %369 = vmatpush.msra.mxu1 %v581_v17 }
  0x83   :  { %v80_v21 = vpop.f32.mrf.mxu0 }
  0x84   :  { %v81_v22 = vadd.f32 %v668_v20, %v80_v21 }
  0x9e   :  { %v148_v23 = vpop.f32.mrf.mxu1 }
  0x9f   :  { %v151_v24 = vadd.f32 %v148_v23, %v81_v22 }
  0xa1   :  { %399 = vtanh.f32 %v151_v24 }
  0xa6   :  { %v83_v33 = vpop.f32.mrf.mxu0 }
  0xa7   :  { %v400_v26 = vpop.eup %399  ;;  %v84_v34 = vadd.f32 %v668_v20, %v83_v33 }
  0xa8   :  { %184 = vmatmul.f32.vlgmr.msra.gmra.mxu2 %v400_v26  ;;  %v156_v27 = vmul.f32 %v400_v26, %v674_v25 }
  0xaa   :  { %157 = vadd.xlane.f32.xlu0 %v156_v27 }
  0xae   :  { %v86_v42 = vpop.f32.mrf.mxu0 }
  0xaf   :  { %v87_v43 = vadd.f32 %v668_v20, %v86_v42 }
  0xb6   :  { %v89_v51 = vpop.f32.mrf.mxu0 }
  0xb7   :  { %v90_v52 = vadd.f32 %v668_v20, %v89_v51 }
  0xbe   :  { %v92_v60 = vpop.f32.mrf.mxu0 }
  0xbf   :  { %v93_v61 = vadd.f32 %v668_v20, %v92_v60 }
  0xc6   :  { %v95_v6 = vpop.f32.mrf.mxu0 }
  0xc7   :  { %v96_v7 = vadd.f32 %v668_v20, %v95_v6 }
  0xce   :  { %v98_v12 = vpop.f32.mrf.mxu0 }
  0xcf   :  { %v99_v16 = vadd.f32 %v668_v20, %v98_v12 }
  0xd6   :  { %v101_v13 = vpop.f32.mrf.mxu0 }
  0xd7   :  { %v102_v24 = vadd.f32 %v668_v20, %v101_v13 }
 0x11d   :  { %v158_v31 = vpop.xlane.xlu0 %157 }
 0x11e   :  { %v162_v32 = vperm.slane %v158_v31, %v681_v30 }
 0x120   :  { %165 = vst.msk [vmem:[%s762_s5] sm:$0x1] %vm164_vm1, %v162_v32 }
 0x12b   :  { %v185_v35 = vpop.f32.mrf.mxu2 }
 0x12c   :  { %v188_v36 = vadd.f32 %v185_v35, %v84_v34 }
 0x12e   :  { %401 = vtanh.f32 %v188_v36 }
 0x134   :  { %v402_v37 = vpop.eup %401 }
 0x135   :  { %215 = vmatmul.f32.vlgmr.msra.gmra.mxu3 %v402_v37  ;;  %v190_v38 = vmul.f32 %v402_v37, %v674_v25 }
 0x137   :  { %191 = vadd.xlane.f32.xlu0 %v190_v38 }
 0x1aa   :  { %v192_v40 = vpop.xlane.xlu0 %191 }
 0x1ab   :  { %v194_v41 = vperm.slane %v192_v40, %v681_v30 }
 0x1ad   :  { %196 = vst.msk [vmem:[%s762_s5 + $0x1] sm:$0x1] %vm164_vm1, %v194_v41 }
 0x1b8   :  { %v216_v44 = vpop.f32.mrf.mxu3 }
 0x1b9   :  { %v219_v45 = vadd.f32 %v216_v44, %v87_v43 }
 0x1bb   :  { %403 = vtanh.f32 %v219_v45 }
 0x1c1   :  { %v404_v46 = vpop.eup %403 }
 0x1c2   :  { %246 = vmatmul.f32.vlgmr.msrb.gmra.mxu1 %v404_v46  ;;  %v221_v47 = vmul.f32 %v404_v46, %v674_v25 }
 0x1c4   :  { %222 = vadd.xlane.f32.xlu1 %v221_v47 }
 0x237   :  { %v223_v49 = vpop.xlane.xlu1 %222 }
 0x238   :  { %v225_v50 = vperm.slane %v223_v49, %v681_v30 }
 0x23a   :  { %227 = vst.msk [vmem:[%s762_s5 + $0x2] sm:$0x1] %vm164_vm1, %v225_v50 }
 0x23f   :  { %v247_v53 = vpop.f32.mrf.mxu1 }
 0x240   :  { %v250_v54 = vadd.f32 %v247_v53, %v90_v52 }
 0x242   :  { %405 = vtanh.f32 %v250_v54 }
 0x248   :  { %v406_v55 = vpop.eup %405 }
 0x249   :  { %277 = vmatmul.f32.vlgmr.msrb.gmra.mxu2 %v406_v55  ;;  %v252_v56 = vmul.f32 %v406_v55, %v674_v25 }
 0x24b   :  { %253 = vadd.xlane.f32.xlu1 %v252_v56 }
 0x2be   :  { %v254_v58 = vpop.xlane.xlu1 %253 }
 0x2bf   :  { %v256_v59 = vperm.slane %v254_v58, %v681_v30 }
 0x2c1   :  { %258 = vst.msk [vmem:[%s762_s5 + $0x3] sm:$0x1] %vm164_vm1, %v256_v59 }
 0x2cc   :  { %v278_v62 = vpop.f32.mrf.mxu2 }
 0x2cd   :  { %v281_v63 = vadd.f32 %v278_v62, %v93_v61 }
 0x2cf   :  { %407 = vtanh.f32 %v281_v63 }
 0x2d5   :  { %v408_v0 = vpop.eup %407 }
 0x2d6   :  { %308 = vmatmul.f32.vlgmr.msrb.gmra.mxu3 %v408_v0  ;;  %v283_v1 = vmul.f32 %v408_v0, %v674_v25 }
 0x2d8   :  { %284 = vadd.xlane.f32.xlu2 %v283_v1 }
 0x34b   :  { %v285_v4 = vpop.xlane.xlu2 %284 }
 0x34c   :  { %v287_v5 = vperm.slane %v285_v4, %v681_v30 }
 0x34e   :  { %289 = vst.msk [vmem:[%s762_s5 + $0x4] sm:$0x1] %vm164_vm1, %v287_v5 }
 0x359   :  { %v309_v8 = vpop.f32.mrf.mxu3 }
 0x35a   :  { %v312_v9 = vadd.f32 %v309_v8, %v96_v7 }
 0x35c   :  { %409 = vtanh.f32 %v312_v9 }
 0x362   :  { %v410_v10 = vpop.eup %409 }
 0x363   :  { %339 = vmatmul.f32.vlgmr.msrb.gmra.mxu0 %v410_v10  ;;  %v314_v11 = vmul.f32 %v410_v10, %v674_v25 }
 0x365   :  { %315 = vadd.xlane.f32.xlu2 %v314_v11 }
 0x3d8   :  { %v316_v14 = vpop.xlane.xlu2 %315 }
 0x3d9   :  { %v318_v15 = vperm.slane %v316_v14, %v681_v30 }
 0x3db   :  { %320 = vst.msk [vmem:[%s762_s5 + $0x5] sm:$0x1] %vm164_vm1, %v318_v15 }
 0x3e0   :  { %v340_v17 = vpop.f32.mrf.mxu0 }
 0x3e1   :  { %v343_v18 = vadd.f32 %v340_v17, %v99_v16 }
 0x3e3   :  { %411 = vtanh.f32 %v343_v18 }
 0x3e9   :  { %v412_v19 = vpop.eup %411 }
 0x3ea   :  { %370 = vmatmul.f32.vlgmr.msra.gmra.mxu1 %v412_v19  ;;  %v345_v21 = vmul.f32 %v412_v19, %v674_v25 }
 0x3ec   :  { %346 = vadd.xlane.f32.xlu0 %v345_v21 }
 0x45f   :  { %v347_v22 = vpop.xlane.xlu0 %346 }
 0x460   :  { %v349_v23 = vperm.slane %v347_v22, %v681_v30 }
 0x462   :  { %351 = vst.msk [vmem:[%s762_s5 + $0x6] sm:$0x1] %vm164_vm1, %v349_v23 }
 0x467   :  { %v371_v26 = vpop.f32.mrf.mxu1 }
 0x468   :  { %v374_v27 = vadd.f32 %v371_v26, %v102_v24 }
 0x46a   :  { %413 = vtanh.f32 %v374_v27 }
 0x470   :  { %v414_v28 = vpop.eup %413 }
 0x471   :  { %v376_v29 = vmul.f32 %v414_v28, %v674_v25 }
 0x473   :  { %377 = vadd.xlane.f32.xlu1 %v376_v29 }
 0x4e6   :  { %v378_v31 = vpop.xlane.xlu1 %377 }
 0x4e7   :  { %v380_v32 = vperm.slane %v378_v31, %v681_v30 }
 0x4e9   :  { %382 = vst.msk [vmem:[%s762_s5 + $0x7] sm:$0x1] %vm164_vm1, %v380_v32 }

</bundles_post_ra>
